<compile_context>
chip_gen: v5e
topology: v5e:2x2
jax: 0.10.0
libtpu: 0.0.40
codegen_flags: <defaults>
</compile_context>

<pallas_src>
import functools

import jax
import jax.numpy as jnp
from jax import lax
from jax.experimental import pallas as pl
from jax.experimental.pallas import tpu as pltpu


def _focal_loss_kernel(logits_ref, labels_ref, *rest,
                       alpha, gamma, has_weights, needs_mask, hw, tile_px):
    """One grid step: a (C, r, 128) tile of logits, (1, r, 128) labels."""
    rest = list(rest)
    wts_ref = rest.pop(0) if has_weights else None
    (out_ref,) = rest

    x = logits_ref[0].astype(jnp.float32)          # (C, r, 128)
    lbl = labels_ref[0]                            # (1, r, 128) int32

    # one-hot of the label class along the leading (cross-vreg) class axis
    class_iota = lax.broadcasted_iota(jnp.int32, x.shape, 0)   # (C, r, 128)
    onehot = class_iota == lbl                                 # (C, r, 128)

    # numerically stable log-softmax, evaluated only at the label class
    m = jnp.max(x, axis=0, keepdims=True)                      # (1, r, 128)
    shifted = x - m
    denom = jnp.sum(jnp.exp(shifted), axis=0, keepdims=True)   # (1, r, 128)
    shifted_lbl = jnp.sum(jnp.where(onehot, shifted, 0.0),
                          axis=0, keepdims=True)               # (1, r, 128)
    log_p = shifted_lbl - jnp.log(denom)                       # log_probs[label]
    p = jnp.exp(log_p)                                         # probs[label]

    omp = 1.0 - p
    if float(gamma) == int(gamma) and int(gamma) >= 0:
        gi = int(gamma)                      # integer gamma -> VALU multiplies
        if gi == 0:
            focal_factor = jnp.ones_like(omp)
        else:
            focal_factor = omp
            for _ in range(gi - 1):
                focal_factor = focal_factor * omp
    else:
        focal_factor = omp ** gamma          # generic float exponent

    loss = (-alpha) * focal_factor * log_p                     # (1, r, 128)

    if has_weights:
        # per-pixel class weight via the same one-hot mask
        w = jnp.sum(jnp.where(onehot, wts_ref[...], 0.0),
                    axis=0, keepdims=True)                     # (1, r, 128)
        loss = loss * w

    if needs_mask:
        # validity mask recomputed in-kernel (no mask array, no extra DMA)
        r = loss.shape[1]
        row_ids = lax.broadcasted_iota(jnp.int32, (1, r, 128), 1)
        lane_ids = lax.broadcasted_iota(jnp.int32, (1, r, 128), 2)
        pix = pl.program_id(1) * tile_px + row_ids * 128 + lane_ids
        loss = jnp.where(pix < hw, loss, 0.0)

    # fold the r sublane-rows into out_rows rows of lane-dense partial sums
    r = loss.shape[1]
    orows = out_ref.shape[2]
    partial = jnp.sum(loss.reshape(r // orows, orows, 128), axis=0)  # (orows,128)
    out_ref[0, 0] = partial


def focal_loss(logits_nchw, labels_nhw, *, alpha=1.0, gamma=2,
               class_weights=None, max_tile_rows=256):
    """Pallas FocalLoss forward.  logits: (N, C, H, W), labels: (N, H, W) int."""
    N, C, H, W = logits_nchw.shape
    HW = H * W
    P = N * HW

    # ---- layout: pixels lane-dense, class axis leading; no transpose needed ----
    pad = (-HW) % 128
    total_r = (HW + pad) // 128
    if total_r > max(max_tile_rows, 8) and total_r % 8 != 0:
        # we would be forced into one giant tile; pad to a multiple of 1024 px
        # instead (a pad copy is rare and cheap relative to the kernel pass)
        pad = (-HW) % 1024
    hw_pad = HW + pad
    total_r = hw_pad // 128

    if pad:
        logits_flat = jnp.pad(logits_nchw.reshape(N, C, HW),
                              ((0, 0), (0, 0), (0, pad)))
        labels_flat = jnp.pad(labels_nhw.reshape(N, HW), ((0, 0), (0, pad)))
    else:
        logits_flat = logits_nchw.reshape(N, C, HW)
        labels_flat = labels_nhw.reshape(N, HW)

    logits_blk = logits_flat.reshape(N, C, total_r, 128)
    labels_blk = labels_flat.reshape(N, 1, total_r, 128).astype(jnp.int32)

    # ---- tile size: as many 128-pixel rows as divide total_r (VMEM-capped) ----
    esz = jnp.dtype(logits_nchw.dtype).itemsize
    bytes_per_row = C * 128 * esz + 128 * 4            # logits + labels, per lane-row
    rows_by_vmem = max(8, (12 * 2**20) // (2 * bytes_per_row))  # double-buffered cap
    cap = min(max_tile_rows, rows_by_vmem, total_r)

    if total_r <= 8 or total_r % 8 != 0 or cap < 8:
        r = total_r                              # full extent (legal block)
    else:
        r = cap - (cap % 8)
        while r > 8 and total_r % r != 0:
            r -= 8
        if total_r % r != 0:
            r = total_r
    num_p = total_r // r
    out_rows = 8 if r % 8 == 0 else r

    has_weights = class_weights is not None
    needs_mask = pad != 0

    inputs = [logits_blk, labels_blk]
    in_specs = [
        pl.BlockSpec((1, C, r, 128), lambda n, p: (n, 0, p, 0)),   # logits tile
        pl.BlockSpec((1, 1, r, 128), lambda n, p: (n, 0, p, 0)),   # labels tile
    ]
    if has_weights:
        wts = jnp.asarray(class_weights, jnp.float32).reshape(C, 1, 1)
        wts = jnp.broadcast_to(wts, (C, 1, 128))                   # lane-dense, resident
        inputs.append(wts)
        in_specs.append(pl.BlockSpec((C, 1, 128), lambda n, p: (0, 0, 0)))

    kernel = functools.partial(_focal_loss_kernel,
                               alpha=float(alpha), gamma=gamma,
                               has_weights=has_weights, needs_mask=needs_mask,
                               hw=HW, tile_px=r * 128)

    # explicit VMEM budget (double-buffered blocks + headroom); respects v7x 64 MiB
    block_bytes = C * r * 128 * esz + r * 128 * 4 + out_rows * 128 * 4
    if has_weights:
        block_bytes += C * 128 * 4
    vmem_limit = int(min(64 * 2**20, max(32 * 2**20, 4 * block_bytes)))

    partials = pl.pallas_call(
        kernel,
        out_shape=jax.ShapeDtypeStruct((N, num_p, out_rows, 128), jnp.float32),
        grid_spec=pltpu.PrefetchScalarGridSpec(
            num_scalar_prefetch=0,
            grid=(N, num_p),
            in_specs=in_specs,
            out_specs=pl.BlockSpec((1, 1, out_rows, 128),
                                   lambda n, p: (n, p, 0, 0)),
        ),
        compiler_params=pltpu.CompilerParams(
            dimension_semantics=("parallel", "parallel"),  # independent partials -> both TCs on v7x
            vmem_limit_bytes=vmem_limit,
        ),
    )(*inputs)

    # final mean over the true pixel count (padded pixels were masked to 0)
    return jnp.sum(partials) / jnp.float32(P)


def _reference_focal_loss(logits_nchw, labels_nhw, alpha=1.0, gamma=2,
                          class_weights=None):
    """Pure-JAX reference mirroring the PyTorch module."""
    probs = jax.nn.softmax(logits_nchw, axis=1)
    log_probs = jax.nn.log_softmax(logits_nchw, axis=1)
    labels = labels_nhw[:, None, :, :]
    class_p = jnp.take_along_axis(probs, labels, axis=1)[:, 0]
    log_class_p = jnp.take_along_axis(log_probs, labels, axis=1)[:, 0]
    focal = -alpha * (1.0 - class_p) ** gamma * log_class_p
    if class_weights is not None:
        focal = focal * jnp.asarray(class_weights)[labels_nhw]
    return jnp.mean(focal)


# TODO(synk): out-of-range / ignore_index labels contribute a zero one-hot row
# (loss 0) rather than raising, matching neither torch.gather UB nor an
# ignore_index reweighting of the mean.

if __name__ == "__main__":
    key = jax.random.PRNGKey(0)
    k1, k2, k3, k4 = jax.random.split(key, 4)

    # Default module config (alpha=1, gamma=2, class_weights=None).
    N, C, H, W = 2, 4, 16, 16
    logits = jax.random.normal(k1, (N, C, H, W), jnp.float32)
    labels = jax.random.randint(k2, (N, H, W), 0, C, jnp.int32)

    out = focal_loss(logits, labels, alpha=1.0, gamma=2, class_weights=None)
    out = jax.block_until_ready(out)
    ref = _reference_focal_loss(logits, labels, alpha=1.0, gamma=2)
    assert jnp.allclose(out, ref, rtol=1e-5, atol=1e-6), (out, ref)

    # class_weights path.
    cw = jnp.array([0.5, 1.0, 2.0, 1.5], jnp.float32)
    out_w = jax.block_until_ready(
        focal_loss(logits, labels, alpha=0.75, gamma=2, class_weights=cw))
    ref_w = _reference_focal_loss(logits, labels, alpha=0.75, gamma=2,
                                  class_weights=cw)
    assert jnp.allclose(out_w, ref_w, rtol=1e-5, atol=1e-6), (out_w, ref_w)

    # ragged spatial size (H*W not a multiple of 128) -> padded + in-kernel mask.
    H2, W2 = 10, 10
    logits2 = jax.random.normal(k3, (N, C, H2, W2), jnp.float32)
    labels2 = jax.random.randint(k4, (N, H2, W2), 0, C, jnp.int32)
    out2 = jax.block_until_ready(focal_loss(logits2, labels2))
    ref2 = _reference_focal_loss(logits2, labels2)
    assert jnp.allclose(out2, ref2, rtol=1e-5, atol=1e-6), (out2, ref2)

    print("KERNEL_OK")
</pallas_src>

<mosaic_0001>
module attributes {stable_mosaic.version = 11 : i64} {
  func.func @_focal_loss_kernel(%arg0: i32, %arg1: i32, %arg2: memref<1x4x2x128xf32, #tpu.memory_space<vmem>>, %arg3: memref<1x1x2x128xi32, #tpu.memory_space<vmem>>, %arg4: memref<1x1x2x128xf32, #tpu.memory_space<vmem>>) attributes {dimension_semantics = [#tpu.dimension_semantics<parallel>, #tpu.dimension_semantics<parallel>], iteration_bounds = array<i64: 2, 1>, scalar_prefetch = 0 : i64, scratch_operands = 0 : i64, tpu.core_type = #tpu.core_type<tc>, window_params = [{transform_indices = @transform_0, window_bounds = array<i64: 1, 4, 2, 128>}, {transform_indices = @transform_1, window_bounds = array<i64: 1, 1, 2, 128>}, {transform_indices = @transform_2, window_bounds = array<i64: 1, 1, 2, 128>}]} {
    %c0 = arith.constant 0 : index
    %c0_0 = arith.constant 0 : index
    %c0_1 = arith.constant 0 : index
    %c0_2 = arith.constant 0 : index
    %0 = vector.load %arg2[%c0, %c0_0, %c0_1, %c0_2] : memref<1x4x2x128xf32, #tpu.memory_space<vmem>>, vector<1x4x2x128xf32>
    %1 = vector.shape_cast %0 : vector<1x4x2x128xf32> to vector<4x2x128xf32>
    %c0_3 = arith.constant 0 : index
    %c0_4 = arith.constant 0 : index
    %c0_5 = arith.constant 0 : index
    %c0_6 = arith.constant 0 : index
    %2 = vector.load %arg3[%c0_3, %c0_4, %c0_5, %c0_6] : memref<1x1x2x128xi32, #tpu.memory_space<vmem>>, vector<1x1x2x128xi32>
    %3 = vector.shape_cast %2 : vector<1x1x2x128xi32> to vector<1x2x128xi32>
    %4 = tpu.iota {dimensions = array<i32: 0>} : vector<4x2x128xi32>
    %5 = vector.broadcast %3 : vector<1x2x128xi32> to vector<4x2x128xi32>
    %6 = arith.cmpi eq, %4, %5 : vector<4x2x128xi32>
    %cst = arith.constant dense<0xFF800000> : vector<2x128xf32>
    %7 = vector.multi_reduction <maximumf>, %1, %cst [0] : vector<4x2x128xf32> to vector<2x128xf32>
    %8 = vector.shape_cast %7 : vector<2x128xf32> to vector<1x2x128xf32>
    %9 = vector.broadcast %8 : vector<1x2x128xf32> to vector<4x2x128xf32>
    %10 = arith.subf %1, %9 : vector<4x2x128xf32>
    %11 = math.exp %10 : vector<4x2x128xf32>
    %cst_7 = arith.constant dense<0.000000e+00> : vector<2x128xf32>
    %12 = vector.multi_reduction <add>, %11, %cst_7 [0] : vector<4x2x128xf32> to vector<2x128xf32>
    %13 = vector.shape_cast %12 : vector<2x128xf32> to vector<1x2x128xf32>
    %cst_8 = arith.constant 0.000000e+00 : f32
    %14 = vector.broadcast %cst_8 : f32 to vector<4x2x128xf32>
    %15 = arith.select %6, %10, %14 : vector<4x2x128xi1>, vector<4x2x128xf32>
    %cst_9 = arith.constant dense<0.000000e+00> : vector<2x128xf32>
    %16 = vector.multi_reduction <add>, %15, %cst_9 [0] : vector<4x2x128xf32> to vector<2x128xf32>
    %17 = vector.shape_cast %16 : vector<2x128xf32> to vector<1x2x128xf32>
    %18 = math.log %13 : vector<1x2x128xf32>
    %19 = arith.subf %17, %18 : vector<1x2x128xf32>
    %20 = math.exp %19 : vector<1x2x128xf32>
    %cst_10 = arith.constant 1.000000e+00 : f32
    %21 = vector.broadcast %cst_10 : f32 to vector<1x2x128xf32>
    %22 = arith.subf %21, %20 : vector<1x2x128xf32>
    %23 = arith.mulf %22, %22 : vector<1x2x128xf32>
    %cst_11 = arith.constant -1.000000e+00 : f32
    %24 = vector.broadcast %cst_11 : f32 to vector<1x2x128xf32>
    %25 = arith.mulf %24, %23 : vector<1x2x128xf32>
    %26 = arith.mulf %25, %19 : vector<1x2x128xf32>
    %cst_12 = arith.constant dense<0.000000e+00> : vector<2x128xf32>
    %27 = vector.multi_reduction <add>, %26, %cst_12 [0] : vector<1x2x128xf32> to vector<2x128xf32>
    %c0_13 = arith.constant 0 : index
    %c0_14 = arith.constant 0 : index
    %c0_15 = arith.constant 0 : index
    %c0_16 = arith.constant 0 : index
    %28 = vector.load %arg4[%c0_13, %c0_14, %c0_15, %c0_16] : memref<1x1x2x128xf32, #tpu.memory_space<vmem>>, vector<1x1x2x128xf32>
    %29 = vector.shape_cast %28 : vector<1x1x2x128xf32> to vector<2x128xf32>
    %30 = vector.shape_cast %27 : vector<2x128xf32> to vector<1x1x2x128xf32>
    tpu.vector_store %arg4[%c0_13, %c0_14, %c0_15, %c0_16], %30 {strides = array<i32>} : memref<1x1x2x128xf32, #tpu.memory_space<vmem>>, vector<1x1x2x128xf32>,
    return
  }
  func.func @transform_0(%arg0: i32, %arg1: i32) -> (i32, i32, i32, i32) {
    %c0_i32 = arith.constant 0 : i32
    %c0_i32_0 = arith.constant 0 : i32
    %c0_i32_1 = arith.constant 0 : i32
    return %arg0, %c0_i32, %arg1, %c0_i32_0 : i32, i32, i32, i32
  }
  func.func @transform_1(%arg0: i32, %arg1: i32) -> (i32, i32, i32, i32) {
    %c0_i32 = arith.constant 0 : i32
    %c0_i32_0 = arith.constant 0 : i32
    %c0_i32_1 = arith.constant 0 : i32
    return %arg0, %c0_i32, %arg1, %c0_i32_0 : i32, i32, i32, i32
  }
  func.func @transform_2(%arg0: i32, %arg1: i32) -> (i32, i32, i32, i32) {
    %c0_i32 = arith.constant 0 : i32
    %c0_i32_0 = arith.constant 0 : i32
    %c0_i32_1 = arith.constant 0 : i32
    return %arg0, %arg1, %c0_i32, %c0_i32_0 : i32, i32, i32, i32
  }
}

</mosaic_0001>

<bundles_post_ra>
// kernel: tpu_custom_call.1
= control target key start
LH: loop header
LB: loop body
LE: loop exit
PB: predicated region body
PF: predicated region fallthrough
CT: control target
= control target key end

     0   :  { %7 = vsyncpa [#allocation3], 0  ;;  %s821_s0 = inlined_call_operand.hbm [shape: f32[2,4,2,128], index: 0, kind: input, shape index: {}]   ;;  %s822_s1 = inlined_call_operand.hbm [shape: s32[2,1,2,128], index: 1, kind: input, shape index: {}]   ;;  %s823_s2 = inlined_call_operand.hbm [shape: f32[2,1,2,128], index: 2, kind: output, shape index: {}]  }
   0x1   :  { %9 = vsyncpa [#allocation3 + $0x1], 0 }
   0x2   :  { %10 = vsyncpa [#allocation6], 0 }
   0x3   :  { %12 = vsyncpa [#allocation6 + $0x1], 0 }
   0x4   :  { %13 = vsyncpa [#allocation4], 0 }
   0x5   :  { %15 = vsyncpa [#allocation4 + $0x1], 0  ;;  %s667_s9 = smov 0   ;;  %s669_s10 = smov 0  }
   0x6   :  { %s671_s11 = smov 0   ;;  %s673_s12 = smov 0  }
   0x7   :  { %s675_s13 = smov 0   ;;  %s677_s14 = smov 0  }
   0x8 LB: > { %s403_s15 = sadd.s32 4294967295, %s648_s14   ;;  %s404_s16 = sadd.s32 4294967294, %s648_s14   ;;  %s648_s14 = sphi %s677_s14, %s21_s14   ;;  %s644_s13 = sphi %s675_s13, %s833_s13   ;;  %s640_s12 = sphi %s673_s12, %s832_s12   ;;  %s636_s11 = sphi %s671_s11, %s831_s11   ;;  %s632_s10 = sphi %s669_s10, %s830_s10   ;;  %s628_s9 = sphi %s667_s9, %s829_s9  }
   0x9   : > { %s33_s17 = sadd.s32 1, %s644_s13  ;;  %s42_s18 = sadd.s32 1, %s636_s11 }
   0xa   : > { %p35_p0 = scmp.ge.s32.totalorder %s33_s17, 2  ;;  %p49_p1 = scmp.ne.s32.totalorder %s636_s11, %s632_s10 }
   0xb   : > { %p50_p2 = scmp.eq.s32.totalorder %s648_s14, 0  ;;  %p55_p3 = scmp.ne.s32.totalorder %s632_s10, %s628_s9 }
   0xc   : > { %s835_s17 = smov (%p35_p0, %s33_s17), 0  ;;  %p56_p5 = scmp.eq.s32.totalorder %s403_s15, 0 }
   0xd   : > { %p708_p4 = por %p50_p2, %p49_p1  ;;  %s37_s20 = ssub.s32 %s644_s13, %s835_s17 }
   0xe   : > { %p109_p6 = scmp.eq.s32.totalorder %s403_s15, 1  ;;  %p40_p7 = scmp.eq.s32.totalorder %s37_s20, 0 }
   0xf   : > { %p714_p8 = por %p56_p5, %p55_p3  ;;  %p115_p10 = scmp.eq.s32.totalorder %s404_s16, 1 }
  0x10   : > { %p718_p9 = por %p109_p6, %p49_p1  ;;  %p406_p12 = scmp.ge.s32.totalorder %s648_s14, 2 }
  0x11   : > { %s723_s23 = scalar_select %p40_p7, %s636_s11, %s42_s18  }
  0x12   : > { %p725_p11 = por %p115_p10, %p55_p3  ;;  %p438_p13 = scmp.lt.s32.totalorder %s648_s14, 2 }
  0x13   : > { %s135_s25 = sand.u32 1, %s636_s11   ;;  %s420_s27 = sshll.u32 %s644_s13, 3 }
  0x14   : > { %s407_s26 = sshll.u32 %s135_s25, 3  ;;  %s145_s30 = scalar_lea.hbm %s821_s0, %s420_s27 }
  0x15   : > { %s139_s3 = scalar_lea.vmem [#allocation2], %s407_s26  ;;  %s146_s5 = sshll.u32 %s145_s30, 4  ;;  %s147_s5 = int_to_ptr.hbm [resolvable:$true] %s146_s5 }
  0x16   : > { %s148_s4 = sshll.u32 %s139_s3, 4  ;;  %p738_p0 = pnand %p438_p13, %p708_p4  ;;  %s149_s4 = int_to_ptr.vmem [resolvable:$true] %s148_s4 }
  0x17   : > { %p412_p1 = scmp.ge.s32.totalorder %s648_s14, 1  ;;  %s136_s7 = scalar_lea.sflag [#allocation3], %s135_s25 }
  0x18   : > { %s650_s8 = smov 32   ;;  %s651_s15 = smov 2  }
  0x19   : > { %430 = dma.hbm_to_vmem [thread:$0]  (!%p738_p0), %s147_s5, 128, %s149_s4, %s136_s7, %s650_s8, %s650_s8, %s651_s15  }
  0x1a   : > { %p176_p2 = scmp.lt.s32.totalorder %s648_s14, 3  ;;  %s410_s16 = sshll.u32 %s135_s25, 1 }
  0x1b   : > { %s411_s18 = sshll.u32 %s644_s13, 1  ;;  %s162_s27 = scalar_lea.vmem [#allocation5], %s410_s16 }
  0x1c   : > { %p177_p3 = pnand %p412_p1, %p176_p2  ;;  %s167_s19 = scalar_lea.hbm %s822_s1, %s411_s18 }
  0x1d   : > { %s171_s28 = sshll.u32 %s162_s27, 4  ;;  %s169_s29 = sshll.u32 %s167_s19, 4  ;;  %s172_s28 = int_to_ptr.vmem [resolvable:$true] %s171_s28  ;;  %s170_s29 = int_to_ptr.hbm [resolvable:$true] %s169_s29 }
  0x1e   : > { %s159_s30 = scalar_lea.sflag [#allocation6], %s135_s25  ;;  %180 = sbr.rel (%p177_p3) target bundleno = 96 (0x60), region = 28 }
  0x1f   : > { %433 = dma.hbm_to_vmem [thread:$0]  (!%p738_p0), %s170_s29, 32, %s172_s28, %s159_s30  }
  0x20   : > { %s753_s3 = sand.u32 (!%p177_p3), 1, %s632_s10  }
  0x21   : > { %s413_s4 = sshll.u32 (!%p177_p3), %s753_s3, 3  ;;  %s183_s5 = scalar_lea.sflag (!%p177_p3), [#allocation3], %s753_s3 }
  0x22   : > { %s186_s7 = scalar_lea.vmem (!%p177_p3), [#allocation2], %s413_s4 }
  0x23   : > { %615 = dma.done.wait (%p714_p8), %s183_s5, 128  }
  0x24   : > { %617 = vsyncadd (%p714_p8), %s183_s5, 4294967168  ;;  %s414_s25 = sshll.u32 %s753_s3, 1  ;;  %s193_s6 = scalar_lea.sflag [#allocation6], %s753_s3 }
  0x25   : > { %s196_s8 = scalar_lea.vmem [#allocation5], %s414_s25 }
  0x26   : > { %619 = dma.done.wait (%p714_p8), %s193_s6, 32  }
  0x27   : > { %621 = vsyncadd (%p714_p8), %s193_s6, 4294967264  ;;  %vm232_vm0 = vcmask 1041408   ;;  %v223_v0 = vld [vmem:[%s186_s7] sm:$0x3]  ;;  %v224_v1 = vld [vmem:[%s186_s7 + $0x2] sm:$0x3] }
  0x28   : > { %v225_v2 = vld [vmem:[%s186_s7 + $0x4] sm:$0x3]  ;;  %v226_v3 = vld [vmem:[%s186_s7 + $0x6] sm:$0x3]  ;;  %v233_v4 = vsel %vm232_vm0, %v223_v0, -inf  ;;  %v234_v5 = vsel %vm232_vm0, %v224_v1, -inf }
  0x29   : > { %v235_v6 = vsel %vm232_vm0, %v225_v2, -inf  ;;  %v236_v7 = vsel %vm232_vm0, %v226_v3, -inf  ;;  %v237_v8 = vmax.f32 %v233_v4, %v234_v5  ;;  %v227_v19 = vld [vmem:[%s196_s8] sm:$0x3]  ;;  %s417_s21 = sshll.u32 %s640_s12, 1  ;;  %s222_s20 = scalar_lea.vmem [#allocation7], %s414_s25 }
  0x2a   : > { %v238_v9 = vmax.f32 %v235_v6, %v236_v7  ;;  %vm228_vm1 = vcmp.eq.s32.totalorder %v227_v19, 0  ;;  %vm229_vm2 = vcmp.eq.s32.totalorder %v227_v19, 1  ;;  %vm230_vm3 = vcmp.eq.s32.totalorder %v227_v19, 2  ;;  %s293_s18 = scalar_lea.hbm %s823_s2, %s417_s21  ;;  %s295_s26 = sshll.u32 %s222_s20, 4  ;;  %s296_s26 = int_to_ptr.vmem [resolvable:$true] %s295_s26 }
  0x2b   : > { %vm231_vm4 = vcmp.eq.s32.totalorder %v227_v19, 3  ;;  %s297_s19 = sshll.u32 %s293_s18, 4  ;;  %s282_s27 = scalar_lea.sflag [#allocation4], %s753_s3  ;;  %s298_s19 = int_to_ptr.hbm [resolvable:$true] %s297_s19 }
  0x2c   : > { %v239_v10 = vmax.f32 %v237_v8, %v238_v9  ;;  %s576_s28 = sshra.s32 %s298_s19, 4  ;;  %s582_s4 = scalar_lea.hbm %s823_s2, 4  ;;  %s577_s28 = int_to_ptr.hbm [resolvable:$true] %s576_s28 }
  0x2d   : > { %s578_s12 = scalar_lea.hbm %s577_s28, 2  ;;  %p583_p7 = scmp.lt.s32.totalorder %s577_s28, %s823_s2 }
  0x2e   : > { %v240_v11 = vsub.f32 %v223_v0, %v239_v10  ;;  %v241_v12 = vsub.f32 %v224_v1, %v239_v10  ;;  %v242_v13 = vsub.f32 %v225_v2, %v239_v10  ;;  %v243_v14 = vsub.f32 %v226_v3, %v239_v10  ;;  %p579_p4 = scmp.ne.s32.totalorder %s577_s28, %s578_s12  ;;  %p584_p8 = scmp.lt.s32.totalorder %s582_s4, %s578_s12 }
  0x30   : > { %v244_v15 = vmul.f32 1.442695, %v240_v11  ;;  %v246_v16 = vmul.f32 1.442695, %v241_v12  ;;  %v248_v17 = vmul.f32 1.442695, %v242_v13  ;;  %p580_p5 = pnand %p579_p4, %p718_p9  ;;  %p585_p10 = por %p584_p8, %p583_p7 }
  0x31   : > { %v250_v18 = vmul.f32 1.442695, %v243_v14  ;;  %v259_v21 = vsel %vm228_vm1, %v240_v11, 0.0  ;;  %v260_v22 = vsel %vm229_vm2, %v241_v12, 0.0  ;;  %v261_v33 = vsel %vm230_vm3, %v242_v13, 0.0 }
  0x32   : > { %490 = vpow2.f32 %v244_v15  ;;  %v263_v30 = vsel %vm232_vm0, %v259_v21, 0.0  ;;  %v264_v31 = vsel %vm232_vm0, %v260_v22, 0.0  ;;  %v266_v37 = vsel %vm232_vm0, %v261_v33, 0.0  ;;  %p581_p6 = pneg %p580_p5 }
  0x33   : > { %492 = vpow2.f32 %v246_v16  ;;  %v265_v35 = vadd.f32 %v264_v31, %v263_v30  ;;  %v262_v38 = vsel %vm231_vm4, %v243_v14, 0.0 }
  0x34   : > { %494 = vpow2.f32 %v248_v17  ;;  %v268_v40 = vsel %vm232_vm0, %v262_v38, 0.0  ;;  %p586_p13 = pnand %p585_p10, %p581_p6 }
  0x35   : > { %496 = vpow2.f32 %v250_v18  ;;  %v267_v39 = vadd.f32 %v266_v37, %v265_v35 }
  0x37   : > { %v269_v41 = vadd.f32 %v268_v40, %v267_v39 }
  0x38   : > { %v491_v20 = vpop.eup %490 }
  0x39   : > { %v493_v23 = vpop.eup %492  ;;  %v252_v24 = vsel %vm232_vm0, %v491_v20, 0.0 }
  0x3a   : > { %v495_v25 = vpop.eup %494  ;;  %v253_v26 = vsel %vm232_vm0, %v493_v23, 0.0 }
  0x3b   : > { %v497_v27 = vpop.eup %496  ;;  %v254_v28 = vadd.f32 %v253_v26, %v252_v24  ;;  %v255_v29 = vsel %vm232_vm0, %v495_v25, 0.0 }
  0x3c   : > { %v257_v32 = vsel %vm232_vm0, %v497_v27, 0.0 }
  0x3d   : > { %v256_v34 = vadd.f32 %v255_v29, %v254_v28 }
  0x3f   : > { %v258_v36 = vadd.f32 %v257_v32, %v256_v34 }
  0x41   : > { %498 = vlog2.f32 %v258_v36 }
  0x47   : > { %v499_v42 = vpop.eup %498 }
  0x48   : > { %v271_v43 = vmul.f32 0.6931472, %v499_v42 }
  0x4a   : > { %v272_v44 = vsub.f32 %v269_v41, %v271_v43 }
  0x4c   : > { %v273_v45 = vmul.f32 1.442695, %v272_v44 }
  0x4e   : > { %500 = vpow2.f32 %v273_v45 }
  0x54   : > { %v501_v46 = vpop.eup %500 }
  0x55   : > { %v275_v47 = vsub.f32 1.0, %v501_v46 }
  0x57   : > { %v276_v48 = vmul.f32 %v275_v47, %v275_v47 }
  0x59   : > { %v277_v49 = vmul.f32 -1.0, %v276_v48 }
  0x5b   : > { %v278_v50 = vmul.f32 %v277_v49, %v272_v44 }
  0x5d   : > { %280 = vst [vmem:[%s222_s20] sm:$0x3] %v278_v50 }
  0x5e   : > { %589 = shalt.err (!%p586_p13)
}
  0x5f   : > { %425 = dma.vmem_to_hbm [thread:$0]  (%p718_p9), %s296_s26, 32, %s298_s19, %s282_s27  }
  0x60 PF: > { %s309_s3 = sand.u32 1, %s628_s9   ;;  %p435_p0 = pnand %p406_p12, %p725_p11 }
  0x61   : > { %s310_s25 = scalar_lea.sflag [#allocation4], %s309_s3 }
  0x62   : > { %p436_p1 = pneg %p435_p0 }
  0x64   : > { %623 = dma.done.wait (%p436_p1), %s310_s25, 32  }
  0x65   : > { %625 = vsyncadd (%p436_p1), %s310_s25, 4294967264  ;;  %s21_s14 = sadd.s32 1, %s648_s14   ;;  %s829_s9 = smov %s632_s10 }
  0x66   : > { %p18_p2 = scmp.ge.s32.totalorder %s21_s14, 4   ;;  %s830_s10 = smov %s636_s11 }
  0x67   : > { %s831_s11 = smov %s723_s23  ;;  %s832_s12 = smov %s644_s13 }
  0x68   : > { %s833_s13 = smov %s835_s17  ;;  %20 = sbr.rel (!%p18_p2) target bundleno = 8 (0x8), region = 86 }
  0x6d   :  { %316 = vsyncpa [#allocation3], 1 }
  0x6e   :  { %318 = vsyncpa [#allocation3 + $0x1], 1 }
  0x6f   :  { %319 = vsyncpa [#allocation6], 1 }
  0x70   :  { %321 = vsyncpa [#allocation6 + $0x1], 1 }
  0x71   :  { %322 = vsyncpa [#allocation4], 1 }
  0x72   :  { %324 = vsyncpa [#allocation4 + $0x1], 1 }

</bundles_post_ra>
